<compile_context>
chip_gen: v5e
topology: v5e:2x2
jax: 0.10.0
libtpu: 0.0.40
codegen_flags: <defaults>
</compile_context>

<pallas_src>
import math
from functools import partial

import jax
import jax.numpy as jnp
from jax import lax
from jax.experimental import pallas as pl
from jax.experimental.pallas import tpu as pltpu

EPS = 1e-6


def _default_vmem_limit():
    """~3/4 of physical VMEM (96 MiB on 128-MiB parts, 48 MiB on v7x); safe 32 MiB fallback."""
    try:
        cap = int(pltpu.get_tpu_info().vmem_capacity_bytes)
        return int(min(100 * 1024 * 1024, cap * 3 // 4))
    except Exception:
        return 32 * 1024 * 1024


VMEM_LIMIT = _default_vmem_limit()

_ROW_TILES = (512, 256, 128, 64, 32, 16, 8)   # second-to-last axis tiles (multiples of 8)
_COL_TILES = (1024, 512, 256, 128)            # last axis tiles (multiples of 128)


def _pick_tile(n, candidates):
    """Largest candidate tile that evenly divides n, else the full extent."""
    for t in candidates:
        if n >= t and n % t == 0:
            return t
    return n


# ---------------------------------------------------------------- in-kernel helpers

def _ln_f32(x, a, b, eps):
    """LayerNorm in f32: a * (x - mean) / (std_unbiased + eps) + b  (matches torch .std())."""
    d = x.shape[-1]
    mean = jnp.mean(x, axis=-1, keepdims=True)
    var = jnp.sum((x - mean) ** 2, axis=-1, keepdims=True) / (d - 1)
    inv = pl.reciprocal(jnp.sqrt(var) + eps, approx=False)
    return a * (x - mean) * inv + b


# ---------------------------------------------------------------- kernels

def _ln_matmul_kernel(x_ref, a_ref, b_ref, w_ref, wb_ref, o_ref, ln_scr, *, eps):
    """out = LayerNorm(x) @ W + b.  LN is computed once per row tile (j == 0) into VMEM."""
    @pl.when(pl.program_id(1) == 0)
    def _ln_once():
        x = x_ref[...].astype(jnp.float32)
        y = _ln_f32(x, a_ref[...].astype(jnp.float32), b_ref[...].astype(jnp.float32), eps)
        ln_scr[...] = y.astype(ln_scr.dtype)

    out = jnp.dot(ln_scr[...], w_ref[...], preferred_element_type=jnp.float32)
    o_ref[...] = (out + wb_ref[...].astype(jnp.float32)).astype(o_ref.dtype)


def _matmul_bias_kernel(x_ref, w_ref, wb_ref, o_ref):
    """out = x @ W + b."""
    out = jnp.dot(x_ref[...], w_ref[...], preferred_element_type=jnp.float32)
    o_ref[...] = (out + wb_ref[...].astype(jnp.float32)).astype(o_ref.dtype)


def _attn_kernel(*refs, n_heads, scale, causal):
    """One (batch, Tq-tile) program: MHA + fused Wo projection + residual add.

    Heads stay packed on the lane axis.  Per-head context vectors are written into a
    lane-dense (tq, D) VMEM scratch; the Wo projection is a single full-depth matmul.
    """
    if causal:
        q_ref, k_ref, v_ref, wo_ref, bo_ref, r_ref, o_ref, ctx_scr = refs
        m_ref = None
    else:
        q_ref, k_ref, v_ref, m_ref, wo_ref, bo_ref, r_ref, o_ref, ctx_scr = refs

    tq, d = q_ref.shape
    s = k_ref.shape[0]
    dk = d // n_heads

    # Mask -> additive bias, computed ONCE per program (hoisted out of the head loop).
    if causal:
        q0 = pl.program_id(1) * tq
        row = lax.broadcasted_iota(jnp.int32, (tq, s), 0) + q0
        col = lax.broadcasted_iota(jnp.int32, (tq, s), 1)
        bias = jnp.where(row >= col, 0.0, -1e9).astype(jnp.float32)
    else:
        mask = m_ref[...].astype(jnp.float32)
        bias = jnp.broadcast_to(jnp.where(mask == 0.0, -1e9, 0.0),
                                (tq, s)).astype(jnp.float32)

    # Pre-scale Q once (instead of scaling the (tq, S) scores in every head).
    q = (q_ref[...].astype(jnp.float32) * scale).astype(k_ref.dtype)
    k = k_ref[...]
    v = v_ref[...]

    # TODO(synk): for many heads / dk < 128, emit QKV head-major (H, T, dk) and iterate with
    # lax.fori_loop to bound vreg live ranges and avoid sub-128 lane slices.
    for h in range(n_heads):                     # static unroll over heads (small H)
        qh = q[:, h * dk:(h + 1) * dk]
        kh = k[:, h * dk:(h + 1) * dk]
        vh = v[:, h * dk:(h + 1) * dk]
        # scores = (q*scale) @ k^T + bias   (contraction over dk, f32 accumulation)
        sc = lax.dot_general(qh, kh, (((1,), (1,)), ((), ())),
                             preferred_element_type=jnp.float32) + bias
        sc = sc - jnp.max(sc, axis=-1, keepdims=True)
        p = jnp.exp(sc)
        denom = jnp.sum(p, axis=-1, keepdims=True)
        ctx = jnp.dot(p.astype(vh.dtype), vh, preferred_element_type=jnp.float32)
        # deferred softmax normalization: (tq, dk) multiplies instead of (tq, S); EUP rcp.
        ctx = ctx * pl.reciprocal(denom, approx=True)
        ctx_scr[:, h * dk:(h + 1) * dk] = ctx.astype(ctx_scr.dtype)

    # Fused output projection at full contraction depth D + residual + bias (f32 accumulate).
    acc = r_ref[...].astype(jnp.float32) + bo_ref[...].astype(jnp.float32)
    acc = acc + jnp.dot(ctx_scr[...], wo_ref[...], preferred_element_type=jnp.float32)
    o_ref[...] = acc.astype(o_ref.dtype)


def _ln_ffn_kernel(x_ref, a_ref, b_ref, w1_ref, b1_ref, w2_ref, b2_ref, o_ref,
                   ln_scr, acc_scr, *, eps):
    """out = x + relu(LayerNorm(x) @ W1 + b1) @ W2 + b2, d_ff tiled on grid axis 1."""
    f = pl.program_id(1)

    @pl.when(f == 0)
    def _init():
        x = x_ref[...].astype(jnp.float32)
        y = _ln_f32(x, a_ref[...].astype(jnp.float32), b_ref[...].astype(jnp.float32), eps)
        ln_scr[...] = y.astype(ln_scr.dtype)
        acc_scr[...] = x + b2_ref[...].astype(jnp.float32)   # residual + final bias

    h = jnp.dot(ln_scr[...], w1_ref[...], preferred_element_type=jnp.float32)
    h = jnp.maximum(h + b1_ref[...].astype(jnp.float32), 0.0)
    acc_scr[...] += jnp.dot(h.astype(w2_ref.dtype), w2_ref[...],
                            preferred_element_type=jnp.float32)

    @pl.when(f == pl.num_programs(1) - 1)
    def _finalize():
        o_ref[...] = acc_scr[...].astype(o_ref.dtype)


def _ln_kernel(x_ref, a_ref, b_ref, o_ref, *, eps):
    x = x_ref[...].astype(jnp.float32)
    y = _ln_f32(x, a_ref[...].astype(jnp.float32), b_ref[...].astype(jnp.float32), eps)
    o_ref[...] = y.astype(o_ref.dtype)


# ---------------------------------------------------------------- Pallas wrappers

def ln_matmul(x2d, a, b, w, wb, *, eps=EPS):
    m, d = x2d.shape
    n = w.shape[1]
    tm = _pick_tile(m, _ROW_TILES)
    tn = _pick_tile(n, _COL_TILES)
    return pl.pallas_call(
        partial(_ln_matmul_kernel, eps=eps),
        out_shape=jax.ShapeDtypeStruct((m, n), x2d.dtype),
        grid=(m // tm, n // tn),
        in_specs=[
            pl.BlockSpec((tm, d), lambda i, j: (i, 0)),
            pl.BlockSpec((1, d), lambda i, j: (0, 0)),
            pl.BlockSpec((1, d), lambda i, j: (0, 0)),
            pl.BlockSpec((d, tn), lambda i, j: (0, j)),
            pl.BlockSpec((1, tn), lambda i, j: (0, j)),
        ],
        out_specs=pl.BlockSpec((tm, tn), lambda i, j: (i, j)),
        scratch_shapes=[pltpu.VMEM((tm, d), x2d.dtype)],     # LN(x), computed once per row tile
        compiler_params=pltpu.CompilerParams(
            dimension_semantics=("parallel", "arbitrary"),
            vmem_limit_bytes=VMEM_LIMIT),
    )(x2d, a.reshape(1, d), b.reshape(1, d), w, wb.reshape(1, n))


def matmul_bias(x2d, w, wb):
    m, d = x2d.shape
    n = w.shape[1]
    tm = _pick_tile(m, _ROW_TILES)
    tn = _pick_tile(n, _COL_TILES)
    return pl.pallas_call(
        _matmul_bias_kernel,
        out_shape=jax.ShapeDtypeStruct((m, n), x2d.dtype),
        grid=(m // tm, n // tn),
        in_specs=[
            pl.BlockSpec((tm, d), lambda i, j: (i, 0)),
            pl.BlockSpec((d, tn), lambda i, j: (0, j)),
            pl.BlockSpec((1, tn), lambda i, j: (0, j)),
        ],
        out_specs=pl.BlockSpec((tm, tn), lambda i, j: (i, j)),
        compiler_params=pltpu.CompilerParams(
            dimension_semantics=("parallel", "parallel"),
            vmem_limit_bytes=VMEM_LIMIT),
    )(x2d, w, wb.reshape(1, n))


def attention_out_residual(q, k, v, mask, wo, bo, resid, n_heads, *,
                           q_col=0, k_col=0, v_col=0, causal=False):
    """x_new = resid + Wo(MHA(q, k, v, mask)) + bo   -- one pallas_call.

    q / k / v may be fused multi-projection slabs (e.g. the (B,T,3D) QKV output); *_col
    selects which D-wide column block to window via the BlockSpec index_map, so no XLA
    slice copies hit HBM.  With causal=True the target mask is generated in-kernel.
    """
    B, Tq, _ = q.shape
    S = k.shape[1]
    D = wo.shape[0]
    dk = D // n_heads
    scale = 1.0 / math.sqrt(dk)
    tq = _pick_tile(Tq, _ROW_TILES)
    if causal:
        assert S == Tq, "causal masking only applies to self-attention"

    # BlockSpec column windows need the window width to be a 128-multiple (or the full last
    # dim); otherwise fall back to an XLA slice so small / odd d_model still works.
    def _window_ok(arr):
        return arr.shape[-1] == D or D % 128 == 0

    if not _window_ok(q):
        q, q_col = q[..., q_col * D:(q_col + 1) * D], 0
    if not _window_ok(k):
        k, k_col = k[..., k_col * D:(k_col + 1) * D], 0
    if not _window_ok(v):
        v, v_col = v[..., v_col * D:(v_col + 1) * D], 0

    in_specs = [
        pl.BlockSpec((None, tq, D), lambda b, i, c=q_col: (b, i, c)),
        pl.BlockSpec((None, S, D), lambda b, i, c=k_col: (b, 0, c)),
        pl.BlockSpec((None, S, D), lambda b, i, c=v_col: (b, 0, c)),
    ]
    inputs = [q, k, v]

    if not causal:
        mask = mask.astype(jnp.float32)
        if mask.shape[0] == 1 and B > 1:
            mask = jnp.broadcast_to(mask, (B,) + mask.shape[1:])
        if mask.shape[1] == 1:   # e.g. (B, 1, S) source mask -- no Tq broadcast in HBM
            in_specs.append(pl.BlockSpec((None, 1, S), lambda b, i: (b, 0, 0)))
        else:                    # general (B, Tq, S) mask
            mask = jnp.broadcast_to(mask, (B, Tq, S))
            in_specs.append(pl.BlockSpec((None, tq, S), lambda b, i: (b, i, 0)))
        inputs.append(mask)

    in_specs += [
        pl.BlockSpec((D, D), lambda b, i: (0, 0)),
        pl.BlockSpec((1, D), lambda b, i: (0, 0)),
        pl.BlockSpec((None, tq, D), lambda b, i: (b, i, 0)),
    ]
    inputs += [wo, bo.reshape(1, D), resid]

    # TODO(synk): for very long source sequences (notably v7x's 64 MiB VMEM), stream K/V over
    # S with a flash-style online-softmax accumulator instead of holding the full (S, D) K/V.
    return pl.pallas_call(
        partial(_attn_kernel, n_heads=n_heads, scale=scale, causal=causal),
        out_shape=jax.ShapeDtypeStruct((B, Tq, D), resid.dtype),
        grid=(B, Tq // tq),
        in_specs=in_specs,
        out_specs=pl.BlockSpec((None, tq, D), lambda b, i: (b, i, 0)),
        scratch_shapes=[pltpu.VMEM((tq, D), q.dtype)],        # lane-dense per-head ctx slab
        compiler_params=pltpu.CompilerParams(
            dimension_semantics=("parallel", "parallel"),
            vmem_limit_bytes=VMEM_LIMIT),
    )(*inputs)


def ln_ffn_residual(x2d, a, b, w1, b1, w2, b2, *, eps=EPS):
    m, d = x2d.shape
    f = w1.shape[1]
    tm = _pick_tile(m, _ROW_TILES)
    tf = _pick_tile(f, _COL_TILES)
    return pl.pallas_call(
        partial(_ln_ffn_kernel, eps=eps),
        out_shape=jax.ShapeDtypeStruct((m, d), x2d.dtype),
        grid=(m // tm, f // tf),
        in_specs=[
            pl.BlockSpec((tm, d), lambda i, kf: (i, 0)),
            pl.BlockSpec((1, d), lambda i, kf: (0, 0)),
            pl.BlockSpec((1, d), lambda i, kf: (0, 0)),
            pl.BlockSpec((d, tf), lambda i, kf: (0, kf)),
            pl.BlockSpec((1, tf), lambda i, kf: (0, kf)),
            pl.BlockSpec((tf, d), lambda i, kf: (kf, 0)),
            pl.BlockSpec((1, d), lambda i, kf: (0, 0)),
        ],
        out_specs=pl.BlockSpec((tm, d), lambda i, kf: (i, 0)),
        scratch_shapes=[pltpu.VMEM((tm, d), x2d.dtype),      # LN(x), computed once per row tile
                        pltpu.VMEM((tm, d), jnp.float32)],   # f32 accumulator (incl. residual)
        compiler_params=pltpu.CompilerParams(
            dimension_semantics=("parallel", "arbitrary"),
            vmem_limit_bytes=VMEM_LIMIT),
    )(x2d, a.reshape(1, d), b.reshape(1, d), w1, b1.reshape(1, f), w2, b2.reshape(1, d))


def layer_norm(x2d, a, b, *, eps=EPS):
    m, d = x2d.shape
    tm = _pick_tile(m, _ROW_TILES)
    return pl.pallas_call(
        partial(_ln_kernel, eps=eps),
        out_shape=jax.ShapeDtypeStruct((m, d), x2d.dtype),
        grid=(m // tm,),
        in_specs=[
            pl.BlockSpec((tm, d), lambda i: (i, 0)),
            pl.BlockSpec((1, d), lambda i: (0, 0)),
            pl.BlockSpec((1, d), lambda i: (0, 0)),
        ],
        out_specs=pl.BlockSpec((tm, d), lambda i: (i, 0)),
        compiler_params=pltpu.CompilerParams(
            dimension_semantics=("parallel",),
            vmem_limit_bytes=VMEM_LIMIT),
    )(x2d, a.reshape(1, d), b.reshape(1, d))


# ---------------------------------------------------------------- model glue (plain JAX)

def decoder_layer(p, x, memory, src_mask, tgt_mask, n_heads, tgt_causal):
    B, T, D = x.shape
    S = memory.shape[1]

    # sublayer 0: self-attention (fused LN0 + QKV proj; fused attn + Wo + residual).
    # The fused (B, T, 3D) QKV slab is windowed by column-block index_maps -- no XLA slices.
    qkv = ln_matmul(x.reshape(B * T, D), p["ln0_a"], p["ln0_b"],
                    p["self_attn"]["wqkv"], p["self_attn"]["bqkv"]).reshape(B, T, 3 * D)
    x = attention_out_residual(qkv, qkv, qkv,
                               None if tgt_causal else tgt_mask,
                               p["self_attn"]["wo"], p["self_attn"]["bo"], x, n_heads,
                               q_col=0, k_col=1, v_col=2, causal=tgt_causal)

    # sublayer 1: source (cross) attention; fused (B, S, 2D) KV slab windowed the same way.
    q = ln_matmul(x.reshape(B * T, D), p["ln1_a"], p["ln1_b"],
                  p["src_attn"]["wq"], p["src_attn"]["bq"]).reshape(B, T, D)
    kv = matmul_bias(memory.reshape(B * S, D),
                     p["src_attn"]["wkv"], p["src_attn"]["bkv"]).reshape(B, S, 2 * D)
    x = attention_out_residual(q, kv, kv, src_mask,
                               p["src_attn"]["wo"], p["src_attn"]["bo"], x, n_heads,
                               q_col=0, k_col=0, v_col=1)

    # sublayer 2: position-wise FFN (fused LN2 + FFN + residual, d_ff-tiled reduction)
    x = ln_ffn_residual(x.reshape(B * T, D), p["ln2_a"], p["ln2_b"],
                        p["ffn_w1"], p["ffn_b1"], p["ffn_w2"], p["ffn_b2"]).reshape(B, T, D)
    return x


def decoder_forward(params, x, memory, src_mask, tgt_mask, n_heads, tgt_mask_is_causal=False):
    """Matches Decoder.forward(x, memory, source_mask, target_mask).

    If tgt_mask_is_causal=True the causal target mask is generated in-kernel (no HBM mask
    traffic for self-attention); otherwise the provided tgt_mask tensor is used.
    """
    for lp in params["layers"]:
        x = decoder_layer(lp, x, memory, src_mask, tgt_mask, n_heads, tgt_mask_is_causal)
    B, T, D = x.shape
    return layer_norm(x.reshape(B * T, D), params["norm_a"], params["norm_b"]).reshape(B, T, D)


# ---------------------------------------------------------------- parameter prep

def init_params(key, n_layers, d_model, d_ff):
    def dense(k, din, dout):
        return jax.random.normal(k, (din, dout), jnp.float32) * 0.02

    def vec(k, dout):
        return jax.random.normal(k, (dout,), jnp.float32) * 0.02

    layers = []
    for i in range(n_layers):
        lk = jax.random.fold_in(key, i)
        ks = jax.random.split(lk, 24)

        def attn_block(j):
            return {"wq": dense(ks[j + 0], d_model, d_model), "bq": vec(ks[j + 1], d_model),
                    "wk": dense(ks[j + 2], d_model, d_model), "bk": vec(ks[j + 3], d_model),
                    "wv": dense(ks[j + 4], d_model, d_model), "bv": vec(ks[j + 5], d_model),
                    "wo": dense(ks[j + 6], d_model, d_model), "bo": vec(ks[j + 7], d_model)}

        layers.append({
            "self_attn": attn_block(0),
            "src_attn": attn_block(8),
            "ffn_w1": dense(ks[16], d_model, d_ff), "ffn_b1": vec(ks[17], d_ff),
            "ffn_w2": dense(ks[18], d_ff, d_model), "ffn_b2": vec(ks[19], d_model),
            "ln0_a": jnp.ones((d_model,), jnp.float32), "ln0_b": jnp.zeros((d_model,), jnp.float32),
            "ln1_a": jnp.ones((d_model,), jnp.float32), "ln1_b": jnp.zeros((d_model,), jnp.float32),
            "ln2_a": jnp.ones((d_model,), jnp.float32), "ln2_b": jnp.zeros((d_model,), jnp.float32),
        })
    return {"layers": layers,
            "norm_a": jnp.ones((d_model,), jnp.float32),
            "norm_b": jnp.zeros((d_model,), jnp.float32)}


def prepare_params(params, dtype):
    """Concatenate Q/K/V (and K/V) projection weights for fused matmuls; cast to compute dtype."""
    def c(t):
        return t.astype(dtype)

    layers = []
    for p in params["layers"]:
        sa, ca = p["self_attn"], p["src_attn"]
        layers.append({
            "self_attn": {
                "wqkv": c(jnp.concatenate([sa["wq"], sa["wk"], sa["wv"]], axis=1)),
                "bqkv": c(jnp.concatenate([sa["bq"], sa["bk"], sa["bv"]], axis=0)),
                "wo": c(sa["wo"]), "bo": c(sa["bo"]),
            },
            "src_attn": {
                "wq": c(ca["wq"]), "bq": c(ca["bq"]),
                "wkv": c(jnp.concatenate([ca["wk"], ca["wv"]], axis=1)),
                "bkv": c(jnp.concatenate([ca["bk"], ca["bv"]], axis=0)),
                "wo": c(ca["wo"]), "bo": c(ca["bo"]),
            },
            "ffn_w1": c(p["ffn_w1"]), "ffn_b1": c(p["ffn_b1"]),
            "ffn_w2": c(p["ffn_w2"]), "ffn_b2": c(p["ffn_b2"]),
            "ln0_a": c(p["ln0_a"]), "ln0_b": c(p["ln0_b"]),
            "ln1_a": c(p["ln1_a"]), "ln1_b": c(p["ln1_b"]),
            "ln2_a": c(p["ln2_a"]), "ln2_b": c(p["ln2_b"]),
        })
    return {"layers": layers, "norm_a": c(params["norm_a"]), "norm_b": c(params["norm_b"])}


# ---------------------------------------------------------------- pure-JAX reference

def _ref_ln(x, a, b, eps=EPS):
    mean = jnp.mean(x, axis=-1, keepdims=True)
    var = jnp.sum((x - mean) ** 2, axis=-1, keepdims=True) / (x.shape[-1] - 1)
    return a * (x - mean) / (jnp.sqrt(var) + eps) + b


def _ref_mha(p, q_in, k_in, v_in, mask, h):
    B, Tq, D = q_in.shape
    S = k_in.shape[1]
    dk = D // h
    q = (q_in @ p["wq"] + p["bq"]).reshape(B, Tq, h, dk).transpose(0, 2, 1, 3)
    k = (k_in @ p["wk"] + p["bk"]).reshape(B, S, h, dk).transpose(0, 2, 1, 3)
    v = (v_in @ p["wv"] + p["bv"]).reshape(B, S, h, dk).transpose(0, 2, 1, 3)
    scores = jnp.einsum("bhtd,bhsd->bhts", q, k) / math.sqrt(dk)
    m = jnp.broadcast_to(mask, (B, Tq, S))[:, None, :, :]
    scores = jnp.where(m == 0, -1e9, scores)
    p_attn = jax.nn.softmax(scores, axis=-1)
    out = jnp.einsum("bhts,bhsd->bhtd", p_attn, v).transpose(0, 2, 1, 3).reshape(B, Tq, D)
    return out @ p["wo"] + p["bo"]


def ref_decoder(params, x, memory, src_mask, tgt_mask, h):
    for p in params["layers"]:
        y = _ref_ln(x, p["ln0_a"], p["ln0_b"])
        x = x + _ref_mha(p["self_attn"], y, y, y, tgt_mask, h)
        y = _ref_ln(x, p["ln1_a"], p["ln1_b"])
        x = x + _ref_mha(p["src_attn"], y, memory, memory, src_mask, h)
        y = _ref_ln(x, p["ln2_a"], p["ln2_b"])
        x = x + (jnp.maximum(y @ p["ffn_w1"] + p["ffn_b1"], 0.0) @ p["ffn_w2"] + p["ffn_b2"])
    return _ref_ln(x, params["norm_a"], params["norm_b"])


# ---------------------------------------------------------------- main

if __name__ == "__main__":
    B, T_TGT, T_SRC, D_MODEL, D_FF, N_HEADS, N_LAYERS = 2, 8, 8, 128, 256, 4, 2

    key = jax.random.PRNGKey(0)
    k_x, k_m, k_p = jax.random.split(key, 3)

    x = jax.random.normal(k_x, (B, T_TGT, D_MODEL), jnp.float32)        # target embeddings
    memory = jax.random.normal(k_m, (B, T_SRC, D_MODEL), jnp.float32)   # encoder output
    src_mask = jnp.ones((B, 1, T_SRC), jnp.float32)                      # attend to all source
    tgt_mask = jnp.broadcast_to(jnp.tril(jnp.ones((T_TGT, T_TGT), jnp.float32)),
                                (B, T_TGT, T_TGT))                       # causal mask

    params = init_params(k_p, N_LAYERS, D_MODEL, D_FF)
    ref = ref_decoder(params, x, memory, src_mask, tgt_mask, N_HEADS)

    # --- strict f32 path: tight check of the kernel semantics (causal tgt mask in-kernel)
    p32 = prepare_params(params, jnp.float32)
    out32 = jax.block_until_ready(
        decoder_forward(p32, x, memory, src_mask, tgt_mask, N_HEADS, tgt_mask_is_causal=True))
    assert out32.shape == (B, T_TGT, D_MODEL)
    assert jnp.all(jnp.isfinite(out32))
    assert jnp.allclose(out32, ref, atol=5e-3, rtol=5e-3), "f32 mismatch vs pure-JAX reference"

    # --- also exercise the explicit HBM target-mask path (general, non-causal API)
    out32_m = jax.block_until_ready(
        decoder_forward(p32, x, memory, src_mask, tgt_mask, N_HEADS, tgt_mask_is_causal=False))
    assert jnp.allclose(out32_m, ref, atol=5e-3, rtol=5e-3), "f32 (explicit mask) mismatch"

    # --- bf16 fast path (f32 accumulation in-kernel): loose check vs the f32 reference
    pbf = prepare_params(params, jnp.bfloat16)
    outbf = jax.block_until_ready(
        decoder_forward(pbf, x.astype(jnp.bfloat16), memory.astype(jnp.bfloat16),
                        src_mask, tgt_mask, N_HEADS, tgt_mask_is_causal=True))
    outbf_f32 = outbf.astype(jnp.float32)
    assert outbf.shape == (B, T_TGT, D_MODEL)
    assert jnp.all(jnp.isfinite(outbf_f32))
    assert jnp.allclose(outbf_f32, ref, atol=1e-1, rtol=1e-1), "bf16 mismatch vs reference"

    print("KERNEL_OK")
</pallas_src>

<mosaic_0001>
module attributes {stable_mosaic.version = 11 : i64} {
  func.func @_ln_matmul_kernel(%arg0: i32, %arg1: i32, %arg2: memref<16x128xf32, #tpu.memory_space<vmem>>, %arg3: memref<1x128xf32, #tpu.memory_space<vmem>>, %arg4: memref<1x128xf32, #tpu.memory_space<vmem>>, %arg5: memref<128x128xf32, #tpu.memory_space<vmem>>, %arg6: memref<1x128xf32, #tpu.memory_space<vmem>>, %arg7: memref<16x128xf32, #tpu.memory_space<vmem>>, %arg8: memref<16x128xf32, #tpu.memory_space<vmem>>) attributes {dimension_semantics = [#tpu.dimension_semantics<parallel>, #tpu.dimension_semantics<arbitrary>], iteration_bounds = array<i64: 1, 3>, scalar_prefetch = 0 : i64, scratch_operands = 1 : i64, tpu.core_type = #tpu.core_type<tc>, window_params = [{transform_indices = @transform_0, window_bounds = array<i64: 16, 128>}, {pipeline_mode = #tpu.pipeline_mode<synchronous>, transform_indices = @transform_1, window_bounds = array<i64: 1, 128>}, {pipeline_mode = #tpu.pipeline_mode<synchronous>, transform_indices = @transform_2, window_bounds = array<i64: 1, 128>}, {transform_indices = @transform_3, window_bounds = array<i64: 128, 128>}, {transform_indices = @transform_4, window_bounds = array<i64: 1, 128>}, {transform_indices = @transform_5, window_bounds = array<i64: 16, 128>}]} {
    %c0_i32 = arith.constant 0 : i32
    %0 = arith.cmpi eq, %arg1, %c0_i32 : i32
    %1 = arith.extui %0 : i1 to i32
    %c0_i32_0 = arith.constant 0 : i32
    %2 = arith.cmpi ne, %1, %c0_i32_0 : i32
    scf.if %2 {
      %c0_8 = arith.constant 0 : index
      %c0_9 = arith.constant 0 : index
      %10 = vector.load %arg2[%c0_8, %c0_9] : memref<16x128xf32, #tpu.memory_space<vmem>>, vector<16x128xf32>
      %c0_10 = arith.constant 0 : index
      %c0_11 = arith.constant 0 : index
      %11 = vector.load %arg3[%c0_10, %c0_11] : memref<1x128xf32, #tpu.memory_space<vmem>>, vector<1x128xf32>
      %c0_12 = arith.constant 0 : index
      %c0_13 = arith.constant 0 : index
      %12 = vector.load %arg4[%c0_12, %c0_13] : memref<1x128xf32, #tpu.memory_space<vmem>>, vector<1x128xf32>
      %cst_14 = arith.constant dense<0.000000e+00> : vector<16xf32>
      %13 = vector.multi_reduction <add>, %10, %cst_14 [1] : vector<16x128xf32> to vector<16xf32>
      %14 = vector.shape_cast %13 : vector<16xf32> to vector<16x1xf32>
      %cst_15 = arith.constant 1.280000e+02 : f32
      %15 = vector.broadcast %cst_15 : f32 to vector<16x1xf32>
      %16 = arith.divf %14, %15 : vector<16x1xf32>
      %17 = vector.broadcast %16 : vector<16x1xf32> to vector<16x128xf32>
      %18 = arith.subf %10, %17 : vector<16x128xf32>
      %19 = arith.mulf %18, %18 : vector<16x128xf32>
      %cst_16 = arith.constant dense<0.000000e+00> : vector<16xf32>
      %20 = vector.multi_reduction <add>, %19, %cst_16 [1] : vector<16x128xf32> to vector<16xf32>
      %21 = vector.shape_cast %20 : vector<16xf32> to vector<16x1xf32>
      %cst_17 = arith.constant 1.270000e+02 : f32
      %22 = vector.broadcast %cst_17 : f32 to vector<16x1xf32>
      %23 = arith.divf %21, %22 : vector<16x1xf32>
      %24 = math.sqrt %23 : vector<16x1xf32>
      %cst_18 = arith.constant 9.99999997E-7 : f32
      %25 = vector.broadcast %cst_18 : f32 to vector<16x1xf32>
      %26 = arith.addf %24, %25 : vector<16x1xf32>
      %27 = tpu.reciprocal %26 : vector<16x1xf32> -> vector<16x1xf32>
      %28 = vector.broadcast %16 : vector<16x1xf32> to vector<16x128xf32>
      %29 = arith.subf %10, %28 : vector<16x128xf32>
      %30 = vector.broadcast %11 : vector<1x128xf32> to vector<16x128xf32>
      %31 = arith.mulf %30, %29 : vector<16x128xf32>
      %32 = vector.broadcast %27 : vector<16x1xf32> to vector<16x128xf32>
      %33 = arith.mulf %31, %32 : vector<16x128xf32>
      %34 = vector.broadcast %12 : vector<1x128xf32> to vector<16x128xf32>
      %35 = arith.addf %33, %34 : vector<16x128xf32>
      %c0_19 = arith.constant 0 : index
      %c0_20 = arith.constant 0 : index
      %36 = vector.load %arg8[%c0_19, %c0_20] : memref<16x128xf32, #tpu.memory_space<vmem>>, vector<16x128xf32>
      tpu.vector_store %arg8[%c0_19, %c0_20], %35 {strides = array<i32>} : memref<16x128xf32, #tpu.memory_space<vmem>>, vector<16x128xf32>,
    } else {
    }
    %c0 = arith.constant 0 : index
    %c0_1 = arith.constant 0 : index
    %3 = vector.load %arg8[%c0, %c0_1] : memref<16x128xf32, #tpu.memory_space<vmem>>, vector<16x128xf32>
    %c0_2 = arith.constant 0 : index
    %c0_3 = arith.constant 0 : index
    %4 = vector.load %arg5[%c0_2, %c0_3] : memref<128x128xf32, #tpu.memory_space<vmem>>, vector<128x128xf32>
    %cst = arith.constant dense<0.000000e+00> : vector<16x128xf32>
    %5 = tpu.matmul %3, %4, %cst {dimension_numbers = #tpu.dot_dimension_numbers<[1], [0], [0], [1], [0, 0, 1, 1], [], []>} : vector<16x128xf32>, vector<128x128xf32>, vector<16x128xf32> -> vector<16x128xf32>
    %c0_4 = arith.constant 0 : index
    %c0_5 = arith.constant 0 : index
    %6 = vector.load %arg6[%c0_4, %c0_5] : memref<1x128xf32, #tpu.memory_space<vmem>>, vector<1x128xf32>
    %7 = vector.broadcast %6 : vector<1x128xf32> to vector<16x128xf32>
    %8 = arith.addf %5, %7 : vector<16x128xf32>
    %c0_6 = arith.constant 0 : index
    %c0_7 = arith.constant 0 : index
    %9 = vector.load %arg7[%c0_6, %c0_7] : memref<16x128xf32, #tpu.memory_space<vmem>>, vector<16x128xf32>
    tpu.vector_store %arg7[%c0_6, %c0_7], %8 {strides = array<i32>} : memref<16x128xf32, #tpu.memory_space<vmem>>, vector<16x128xf32>,
    return
  }
  func.func @transform_0(%arg0: i32, %arg1: i32) -> (i32, i32) {
    %c0_i32 = arith.constant 0 : i32
    %c0_i32_0 = arith.constant 0 : i32
    return %arg0, %c0_i32 : i32, i32
  }
  func.func @transform_1(%arg0: i32, %arg1: i32) -> (i32, i32) {
    %c0_i32 = arith.constant 0 : i32
    %c0_i32_0 = arith.constant 0 : i32
    %c0_i32_1 = arith.constant 0 : i32
    return %c0_i32, %c0_i32_0 : i32, i32
  }
  func.func @transform_2(%arg0: i32, %arg1: i32) -> (i32, i32) {
    %c0_i32 = arith.constant 0 : i32
    %c0_i32_0 = arith.constant 0 : i32
    %c0_i32_1 = arith.constant 0 : i32
    return %c0_i32, %c0_i32_0 : i32, i32
  }
  func.func @transform_3(%arg0: i32, %arg1: i32) -> (i32, i32) {
    %c0_i32 = arith.constant 0 : i32
    %c0_i32_0 = arith.constant 0 : i32
    return %c0_i32, %arg1 : i32, i32
  }
  func.func @transform_4(%arg0: i32, %arg1: i32) -> (i32, i32) {
    %c0_i32 = arith.constant 0 : i32
    %c0_i32_0 = arith.constant 0 : i32
    return %c0_i32, %arg1 : i32, i32
  }
  func.func @transform_5(%arg0: i32, %arg1: i32) -> (i32, i32) {
    %c0_i32 = arith.constant 0 : i32
    return %arg0, %arg1 : i32, i32
  }
}

</mosaic_0001>

<bundles_post_ra>
// kernel: tpu_custom_call.1
= control target key start
LH: loop header
LB: loop body
LE: loop exit
PB: predicated region body
PF: predicated region fallthrough
CT: control target
= control target key end

     0   :  { %s1251_s0 = inlined_call_operand.hbm [shape: f32[16,128], index: 0, kind: input, shape index: {}]   ;;  %s1252_s1 = inlined_call_operand.hbm [shape: f32[1,128], index: 1, kind: input, shape index: {}]   ;;  %s1253_s2 = inlined_call_operand.hbm [shape: f32[1,128], index: 2, kind: input, shape index: {}]   ;;  %s1254_s3 = inlined_call_operand.hbm [shape: f32[128,384], index: 3, kind: input, shape index: {}]   ;;  %s1255_s4 = inlined_call_operand.vmem [shape: f32[1,384], index: 4, kind: input, shape index: {}]   ;;  %s1256_s5 = inlined_call_operand.hbm [shape: f32[16,384], index: 5, kind: output, shape index: {}]  }
   0x1   :  { %1260 = sst [smem:[#allocation17_spill]] %s1251_s0 }
   0x2   :  { %1261 = sst [smem:[#allocation18_spill]] %s1252_s1 }
   0x3   :  { %1262 = sst [smem:[#allocation19_spill]] %s1253_s2 }
   0x4   :  { %10 = vsyncpa [#allocation4], 0 }
   0x5   :  { %11 = vsyncpa [#allocation7], 0 }
   0x6   :  { %12 = vsyncpa [#allocation10], 0 }
   0x7   :  { %14 = vsyncpa [#allocation10 + $0x1], 0 }
   0x8   :  { %15 = vsyncpa [#allocation5], 0 }
   0x9   :  { %17 = vsyncpa [#allocation5 + $0x1], 0  ;;  %s1029_s18 = smov 0   ;;  %s1031_s19 = smov 0  }
   0xa   :  { %s1033_s20 = smov 0   ;;  %s1035_s21 = smov 0  }
   0xb   :  { %s1037_s22 = smov 0   ;;  %s1039_s23 = smov 0  }
   0xc LB: > { %s624_s24 = sadd.s32 4294967295, %s986_s23   ;;  %s625_s25 = sadd.s32 4294967294, %s986_s23   ;;  %s986_s23 = sphi %s1039_s23, %s23_s23   ;;  %s982_s22 = sphi %s1037_s22, %s1283_s22   ;;  %s978_s21 = sphi %s1035_s21, %s1282_s21   ;;  %s974_s20 = sphi %s1033_s20, %s1281_s20   ;;  %s970_s19 = sphi %s1031_s19, %s1280_s19   ;;  %s966_s18 = sphi %s1029_s18, %s1279_s18  }
   0xd   : > { %p117_p0 = scmp.ne.s32.totalorder %s974_s20, %s970_s19  ;;  %p118_p1 = scmp.eq.s32.totalorder %s986_s23, 0 }
   0xe   : > { %p123_p2 = scmp.ne.s32.totalorder %s970_s19, %s966_s18  ;;  %p1067_p3 = scmp.eq.s32.totalorder %s624_s24, 0 }
   0xf   : > { %p175_p4 = scmp.eq.s32.totalorder %s624_s24, 2  ;;  %p1071_p5 = por %p118_p1, %p117_p0 }
  0x10   : > { %p181_p6 = scmp.eq.s32.totalorder %s625_s25, 2  ;;  %p1077_p7 = por %p1067_p3, %p123_p2 }
  0x11   : > { %p1081_p8 = por %p175_p4, %p117_p0  ;;  %p626_p10 = scmp.ge.s32.totalorder %s986_s23, 1 }
  0x12   : > { %p1085_p9 = por %p181_p6, %p123_p2  ;;  %p188_p11 = scmp.lt.s32.totalorder %s986_s23, 4 }
  0x13   : > { %s1269_s1 = sld [smem:[#allocation18_spill]]  ;;  %s988_s11 = smov [#allocation6]  }
  0x14   : > { %s1267_s6 = scalar_select %p1085_p9, 1, 0 }
  0x15   : > { %p1094_p12 = pnand %p626_p10, %p188_p11  ;;  %s219_s12 = sshll.u32 %s988_s11, 4  ;;  %s220_s12 = int_to_ptr.vmem [resolvable:$true] %s219_s12 }
  0x16   : > { %1268 = sst [smem:[#allocation16_spill]] %s1267_s6  ;;  %p697_p0 = scmp.lt.s32.totalorder %s986_s23, 3 }
  0x17   : > { %p676_p13 = pneg %p1094_p12  ;;  %s1273_s0 = sld [smem:[#allocation17_spill]] }
  0x18   : > { %p1109_p2 = pnand %p697_p0, %p1071_p5  ;;  %s989_s24 = smov [#allocation3]  }
  0x19   : > { %s217_s9 = sshll.u32 %s1269_s1, 4  ;;  %p1103_p1 = pnand %p676_p13, %p1067_p3  ;;  %s218_s9 = int_to_ptr.hbm [resolvable:$true] %s217_s9 }
  0x1a   : > { %s204_s25 = sshll.u32 %s989_s24, 4  ;;  %s1257_s28 = smov 128   ;;  %s205_s25 = int_to_ptr.vmem [resolvable:$true] %s204_s25 }
  0x1b   : > { %682 = dma.hbm_to_vmem [thread:$0]  (!%p1103_p1), %s218_s9, 16, %s220_s12, [#allocation7]  }
  0x1c   : > { %s1258_s7 = smov 8   ;;  %s1274_s2 = sld [smem:[#allocation19_spill]] }
  0x1d   : > { %s202_s17 = sshll.u32 %s1273_s0, 4  ;;  %s992_s16 = smov [#allocation8]   ;;  %s203_s17 = int_to_ptr.hbm [resolvable:$true] %s202_s17 }
  0x1e   : > { %679 = dma.hbm_to_vmem [thread:$0]  (!%p1103_p1), %s203_s17, 256, %s205_s25, [#allocation4], %s1257_s28, %s1257_s28, %s1258_s7  }
  0x1f   : > { %s231_s26 = sshll.u32 %s992_s16, 4  ;;  %s242_s9 = sand.u32 1, %s974_s20   ;;  %s232_s26 = int_to_ptr.vmem [resolvable:$true] %s231_s26 }
  0x20   : > { %s32_s12 = sadd.s32 1, %s982_s22  ;;  %s631_s24 = sshll.u32 %s242_s9, 7 }
  0x21   : > { %p33_p4 = scmp.ge.s32.totalorder %s32_s12, 3  ;;  %s632_s0 = sshll.u32 %s982_s22, 3 }
  0x22   : > { %s229_s15 = sshll.u32 %s1274_s2, 4  ;;  %s250_s8 = scalar_lea.hbm %s1254_s3, %s632_s0  ;;  %s230_s15 = int_to_ptr.hbm [resolvable:$true] %s229_s15 }
  0x23   : > { %685 = dma.hbm_to_vmem [thread:$0]  (!%p1103_p1), %s230_s15, 16, %s232_s26, [#allocation7]  }
  0x24   : > { %s1285_s12 = smov (%p33_p4, %s32_s12), 0  ;;  %s246_s11 = scalar_lea.vmem [#allocation9], %s631_s24 }
  0x25   : > { %s253_s16 = sshll.u32 %s246_s11, 4  ;;  %s107_s28 = ssub.s32 %s982_s22, %s1285_s12  ;;  %s254_s16 = int_to_ptr.vmem [resolvable:$true] %s253_s16 }
  0x26   : > { %s251_s13 = sshll.u32 %s250_s8, 4  ;;  %p108_p5 = scmp.eq.s32.totalorder %s107_s28, 0  ;;  %s252_s13 = int_to_ptr.hbm [resolvable:$true] %s251_s13 }
  0x27   : > { %s1275_s26 = sadd.s32 1, %s974_s20  ;;  %s243_s7 = scalar_lea.sflag [#allocation10], %s242_s9 }
  0x28   : > { %s1141_s15 = scalar_select %p108_p5, %s974_s20, %s1275_s26  }
  0x29   : > { %s993_s1 = smov 384   ;;  %s1276_s2 = smov 8  }
  0x2a   : > { %s1277_s6 = smov 128   ;;  %271 = sbr.rel (%p1094_p12) target bundleno = 522 (0x20a), region = 40 }
  0x2b   : > { %689 = dma.hbm_to_vmem [thread:$0]  (!%p1109_p2), %s252_s13, 2048, %s254_s16, %s243_s7, %s993_s1, %s1277_s6, %s1276_s2  }
  0x2f   : > { %949 = dma.done.wait (%p1067_p3), [#allocation4], 256  }
  0x30   : > { %951 = vsyncadd (%p1067_p3), [#allocation4], 4294967040 }
  0x31   : > { %953 = dma.done.wait (%p1067_p3), [#allocation7], 32  }
  0x32   : > { %955 = vsyncadd (%p1067_p3), [#allocation7], 4294967264  ;;  %s1158_s0 = sand.u32 1, %s970_s19  }
  0x33   : > { %s637_s1 = sshll.u32 %s1158_s0, 7  ;;  %s289_s2 = scalar_lea.sflag [#allocation10], %s1158_s0 }
  0x34   : > { %s1162_s6 = scalar_lea.vmem [#allocation9], %s637_s1 }
  0x35   : > { %957 = dma.done.wait (%p1077_p7), %s289_s2, 2048  }
  0x36   : > { %959 = vsyncadd (%p1077_p7), %s289_s2, 4294965248  ;;  %s638_s27 = sshll.u32 %s1158_s0, 4  ;;  %p324_p3 = scmp.lt.s32.totalorder %s978_s21, 2 }
  0x37   : > { %s1177_s9 = scalar_lea.vmem [#allocation11], %s638_s27  ;;  %p639_p6 = scmp.ne.s32.totalorder %s978_s21, 0 }
  0x38   : > { %s1171_s10 = scalar_select %p324_p3, %s978_s21, 2 }
  0x39   : > { %331 = sbr.rel (%p639_p6) target bundleno = 356 (0x164), region = 60 }
  0x3a   : > { %s326_s7 = scalar_lea.vmem %s1255_s4, %s1171_s10 }
  0x3e   : > { %v332_v0 = vld [vmem:[#allocation3] sm:$0xff]  ;;  %v333_v1 = vld [vmem:[#allocation3 + $0x8] sm:$0xff]  ;;  %v994_v2 = vmov 128.0   ;;  %v995_v17 = vmov 127.0   ;;  %v761_v54 = vld [vmem:[#allocation6] ss:$0 sm:$0xff] }
  0x3f   : > { %336 = vadd.xlane.f32.xlu0 %v332_v0  ;;  %763 = vrcp.f32 %v994_v2  ;;  %v762_v61 = vld [vmem:[#allocation8] ss:$0 sm:$0xff] }
  0x40   : > { %765 = vrcp.f32 %v995_v17 }
  0x45   : > { %v764_v3 = vpop.eup %763 }
  0x46   : > { %v341_v4 = vmul.f32 128.0, %v764_v3  ;;  %vm345_vm0 = vweird.f32 %v764_v3  ;;  %v766_v18 = vpop.eup %765 }
  0x47   : > { %338 = vadd.xlane.f32.xlu0 %v333_v1  ;;  %v358_v19 = vmul.f32 127.0, %v766_v18  ;;  %vm362_vm1 = vweird.f32 %v766_v18 }
  0x48   : > { %v342_v5 = vsub.f32 1.0, %v341_v4 }
  0x49   : > { %v359_v20 = vsub.f32 1.0, %v358_v19 }
  0x4a   : > { %v343_v6 = vmul.f32 %v764_v3, %v342_v5 }
  0x4b   : > { %v360_v21 = vmul.f32 %v766_v18, %v359_v20 }
  0x4c   : > { %v344_v7 = vadd.f32 %v764_v3, %v343_v6 }
  0x4d   : > { %v361_v22 = vadd.f32 %v766_v18, %v360_v21 }
  0x4e   : > { %v346_v8 = vsel %vm345_vm0, %v764_v3, %v344_v7 }
  0x4f   : > { %v363_v23 = vsel %vm362_vm1, %v766_v18, %v361_v22 }
  0xb2   : > { %v337_v9 = vpop.xlane.xlu0 %336 }
  0xb3   : > { %v347_v10 = vmul.f32 %v346_v8, %v337_v9 }
  0xb5   : > { %v1180_v11 = vsub.f32 %v332_v0, %v347_v10 }
  0xb7   : > { %v351_v12 = vmul.f32 %v1180_v11, %v1180_v11  ;;  %v423_v60 = vmul.f32 %v761_v54, %v1180_v11 }
  0xb9   : > { %353 = vadd.xlane.f32.xlu1 %v351_v12 }
  0xba   : > { %v339_v13 = vpop.xlane.xlu0 %338 }
  0xbb   : > { %v348_v14 = vmul.f32 %v346_v8, %v339_v13 }
  0xbd   : > { %v1184_v15 = vsub.f32 %v333_v1, %v348_v14 }
  0xbf   : > { %v352_v16 = vmul.f32 %v1184_v15, %v1184_v15  ;;  %v424_v9 = vmul.f32 %v761_v54, %v1184_v15 }
  0xc1   : > { %355 = vadd.xlane.f32.xlu1 %v352_v16 }
 0x12c   : > { %v354_v24 = vpop.xlane.xlu1 %353 }
 0x12d   : > { %v364_v25 = vmul.f32 %v363_v23, %v354_v24 }
 0x12f   : > { %767 = vrsqrt.f32 %v364_v25  ;;  %vm373_vm2 = vcmp.eq.f32.partialorder %v364_v25, inf  ;;  %v376_v38 = vand.u32 2147483648, %v364_v25  ;;  %vm375_vm3 = vcmp.eq.f32.partialorder %v364_v25, 0.0 }
 0x134   : > { %v356_v26 = vpop.xlane.xlu1 %355 }
 0x135   : > { %v768_v27 = vpop.eup %767  ;;  %v365_v28 = vmul.f32 %v363_v23, %v356_v26 }
 0x136   : > { %v367_v29 = vmul.f32 %v768_v27, %v364_v25 }
 0x137   : > { %769 = vrsqrt.f32 %v365_v28  ;;  %vm385_vm4 = vcmp.eq.f32.partialorder %v365_v28, inf  ;;  %v388_v46 = vand.u32 2147483648, %v365_v28  ;;  %vm387_vm5 = vcmp.eq.f32.partialorder %v365_v28, 0.0 }
 0x138   : > { %v368_v30 = vmul.f32 %v768_v27, %v367_v29 }
 0x13a   : > { %v369_v31 = vmul.f32 0.5, %v368_v30 }
 0x13c   : > { %v370_v32 = vsub.f32 1.5, %v369_v31 }
 0x13d   : > { %v770_v33 = vpop.eup %769 }
 0x13e   : > { %v371_v34 = vmul.f32 %v768_v27, %v370_v32  ;;  %v379_v35 = vmul.f32 %v770_v33, %v365_v28 }
 0x140   : > { %v372_v36 = vmul.f32 %v371_v34, %v364_v25  ;;  %v380_v37 = vmul.f32 %v770_v33, %v379_v35 }
 0x142   : > { %v374_v39 = vsel %vm373_vm2, %v364_v25, %v372_v36  ;;  %v381_v40 = vmul.f32 0.5, %v380_v37 }
 0x143   : > { %v377_v41 = vsel %vm375_vm3, %v376_v38, %v374_v39 }
 0x144   : > { %v390_v42 = vadd.f32 1e-06, %v377_v41  ;;  %v382_v43 = vsub.f32 1.5, %v381_v40 }
 0x146   : > { %771 = vrcp.f32 %v390_v42  ;;  %v383_v44 = vmul.f32 %v770_v33, %v382_v43  ;;  %v403_v53 = vand.u32 2147483648, %v390_v42  ;;  %v401_v56 = vand.u32 2147483647, %v390_v42 }
 0x147   : > { %vm397_vm7 = vweird.f32 %v390_v42 }
 0x148   : > { %v384_v45 = vmul.f32 %v383_v44, %v365_v28  ;;  %v404_v58 = vor.u32 1.1754944e-38, %v403_v53  ;;  %vm402_vm9 = vcmp.eq.f32.partialorder %v401_v56, 8.507059e+37 }
 0x14a   : > { %v386_v47 = vsel %vm385_vm4, %v365_v28, %v384_v45 }
 0x14b   : > { %v389_v49 = vsel %vm387_vm5, %v388_v46, %v386_v47 }
 0x14c   : > { %v772_v48 = vpop.eup %771  ;;  %v391_v51 = vadd.f32 1e-06, %v389_v49 }
 0x14d   : > { %v393_v50 = vmul.f32 %v772_v48, %v390_v42  ;;  %vm398_vm6 = vweird.f32 %v772_v48 }
 0x14e   : > { %773 = vrcp.f32 %v391_v51  ;;  %vm399_vm8 = vmor %vm397_vm7, %vm398_vm6  ;;  %v417_v4 = vand.u32 2147483648, %v391_v51  ;;  %v415_v6 = vand.u32 2147483647, %v391_v51  ;;  %vm411_vm11 = vweird.f32 %v391_v51 }
 0x14f   : > { %v394_v52 = vsub.f32 1.0, %v393_v50 }
 0x150   : > { %v418_v8 = vor.u32 1.1754944e-38, %v417_v4  ;;  %vm416_vm13 = vcmp.eq.f32.partialorder %v415_v6, 8.507059e+37 }
 0x151   : > { %v395_v55 = vmul.f32 %v772_v48, %v394_v52 }
 0x153   : > { %v396_v57 = vadd.f32 %v772_v48, %v395_v55 }
 0x154   : > { %v774_v59 = vpop.eup %773 }
 0x155   : > { %v400_v62 = vsel %vm399_vm8, %v772_v48, %v396_v57  ;;  %v407_v0 = vmul.f32 %v774_v59, %v391_v51  ;;  %vm412_vm10 = vweird.f32 %v774_v59 }
 0x156   : > { %v405_v63 = vsel %vm402_vm9, %v404_v58, %v400_v62  ;;  %vm413_vm12 = vmor %vm411_vm11, %vm412_vm10 }
 0x157   : > { %v425_v1 = vmul.f32 %v423_v60, %v405_v63  ;;  %v408_v2 = vsub.f32 1.0, %v407_v0 }
 0x159   : > { %v430_v3 = vadd.f32 %v762_v61, %v425_v1  ;;  %v409_v5 = vmul.f32 %v774_v59, %v408_v2 }
 0x15b   : > { %432 = vst [vmem:[#allocation2] sm:$0xff] %v430_v3  ;;  %v410_v7 = vadd.f32 %v774_v59, %v409_v5 }
 0x15d   : > { %v414_v10 = vsel %vm413_vm12, %v774_v59, %v410_v7 }
 0x15e   : > { %v419_v11 = vsel %vm416_vm13, %v418_v8, %v414_v10 }
 0x15f   : > { %v426_v12 = vmul.f32 %v424_v9, %v419_v11 }
 0x161   : > { %v431_v13 = vadd.f32 %v762_v61, %v426_v12 }
 0x163   : > { %433 = vst [vmem:[#allocation2 + $0x8] sm:$0xff] %v431_v13 }
 0x164 PF: > { %v451_v14 = vld [vmem:[%s1162_s6 + $0x78] sm:$0xff]  ;;  %v450_v16 = vld [vmem:[%s1162_s6 + $0x70] sm:$0xff]  ;;  %v449_v15 = vld [vmem:[%s1162_s6 + $0x68] sm:$0xff]  ;;  %s641_s29 = sshll.u32 %s978_s21, 3  ;;  %s496_s16 = sshll.u32 %s1177_s9, 4  ;;  %s497_s16 = int_to_ptr.vmem [resolvable:$true] %s496_s16 }
 0x165   : > { %456 = vmatpush.msra.mxu0 %v451_v14  ;;  %644 = vmatpush.msra.mxu1 %v451_v14  ;;  %v448_v17 = vld [vmem:[%s1162_s6 + $0x60] sm:$0xff]  ;;  %v447_v18 = vld [vmem:[%s1162_s6 + $0x58] sm:$0xff]  ;;  %v446_v19 = vld [vmem:[%s1162_s6 + $0x50] sm:$0xff]  ;;  %s495_s25 = scalar_lea.hbm %s1256_s5, %s641_s29  ;;  %s482_s21 = scalar_lea.sflag [#allocation5], %s1158_s0 }
 0x166   : > { %v445_v20 = vld [vmem:[%s1162_s6 + $0x48] sm:$0xff]  ;;  %v444_v21 = vld [vmem:[%s1162_s6 + $0x40] sm:$0xff]  ;;  %v443_v22 = vld [vmem:[%s1162_s6 + $0x38] sm:$0xff]  ;;  %s498_s13 = sshll.u32 %s495_s25, 4  ;;  %s916_s27 = scalar_lea.hbm %s1256_s5, 48  ;;  %s499_s13 = int_to_ptr.hbm [resolvable:$true] %s498_s13 }
 0x167   : > { %457 = vmatpush.msra.mxu0 %v450_v16  ;;  %645 = vmatpush.msra.mxu1 %v450_v16  ;;  %v442_v23 = vld [vmem:[%s1162_s6 + $0x30] sm:$0xff]  ;;  %v441_v24 = vld [vmem:[%s1162_s6 + $0x28] sm:$0xff]  ;;  %v440_v25 = vld [vmem:[%s1162_s6 + $0x20] sm:$0xff]  ;;  %s910_s26 = sshra.s32 %s499_s13, 4  ;;  %s911_s26 = int_to_ptr.hbm [resolvable:$true] %s910_s26 }
 0x168   : > { %v439_v26 = vld [vmem:[%s1162_s6 + $0x18] sm:$0xff]  ;;  %v438_v27 = vld [vmem:[%s1162_s6 + $0x10] sm:$0xff]  ;;  %v437_v28 = vld [vmem:[%s1162_s6 + $0x8] sm:$0xff]  ;;  %s912_s1 = scalar_lea.hbm %s911_s26, 16  ;;  %p917_p12 = scmp.lt.s32.totalorder %s911_s26, %s1256_s5 }
 0x169   : > { %458 = vmatpush.msra.mxu0 %v449_v15  ;;  %646 = vmatpush.msra.mxu1 %v449_v15  ;;  %v436_v29 = vld [vmem:[%s1162_s6] sm:$0xff]  ;;  %v775_v32 = vld [vmem:[%s326_s7] ss:$0 sm:$0xff]  ;;  %p913_p7 = scmp.ne.s32.totalorder %s911_s26, %s912_s1  ;;  %p918_p13 = scmp.lt.s32.totalorder %s916_s27, %s912_s1 }
 0x16a   : > { %v434_v30 = vld [vmem:[#allocation2] sm:$0xff]  ;;  %v435_v31 = vld [vmem:[#allocation2 + $0x8] sm:$0xff] }
 0x16b   : > { %459 = vmatpush.msra.mxu0 %v448_v17  ;;  %647 = vmatpush.msra.mxu1 %v448_v17  ;;  %p914_p10 = pnand %p913_p7, %p1081_p8  ;;  %p919_p0 = por %p918_p13, %p917_p12 }
 0x16d   : > { %460 = vmatpush.msra.mxu0 %v447_v18  ;;  %648 = vmatpush.msra.mxu1 %v447_v18  ;;  %p915_p11 = pneg %p914_p10 }
 0x16f   : > { %461 = vmatpush.msra.mxu0 %v446_v19  ;;  %649 = vmatpush.msra.mxu1 %v446_v19  ;;  %p920_p1 = pnand %p919_p0, %p915_p11 }
 0x171   : > { %462 = vmatpush.msra.mxu0 %v445_v20  ;;  %650 = vmatpush.msra.mxu1 %v445_v20 }
 0x173   : > { %463 = vmatpush.msra.mxu0 %v444_v21  ;;  %651 = vmatpush.msra.mxu1 %v444_v21 }
 0x175   : > { %464 = vmatpush.msra.mxu0 %v443_v22  ;;  %652 = vmatpush.msra.mxu1 %v443_v22 }
 0x177   : > { %465 = vmatpush.msra.mxu0 %v442_v23  ;;  %653 = vmatpush.msra.mxu1 %v442_v23 }
 0x179   : > { %466 = vmatpush.msra.mxu0 %v441_v24  ;;  %654 = vmatpush.msra.mxu1 %v441_v24 }
 0x17b   : > { %467 = vmatpush.msra.mxu0 %v440_v25  ;;  %655 = vmatpush.msra.mxu1 %v440_v25 }
 0x17d   : > { %468 = vmatpush.msra.mxu0 %v439_v26  ;;  %656 = vmatpush.msra.mxu1 %v439_v26 }
 0x17f   : > { %469 = vmatpush.msra.mxu0 %v438_v27  ;;  %657 = vmatpush.msra.mxu1 %v438_v27 }
 0x181   : > { %470 = vmatpush.msra.mxu0 %v437_v28  ;;  %658 = vmatpush.msra.mxu1 %v437_v28 }
 0x183   : > { %471 = vmatpush.msra.mxu0 %v436_v29  ;;  %659 = vmatpush.msra.mxu1 %v436_v29 }
 0x184   : > { %472 = vmatmul.f32.vlgmr.msra.gmra.mxu0 %v434_v30  ;;  %475 = vmatmul.f32.vlgmr.msra.gmra.mxu1 %v435_v31 }
 0x201   : > { %v473_v33 = vpop.f32.mrf.mxu0  ;;  %v476_v34 = vpop.f32.mrf.mxu1 }
 0x202   : > { %v474_v35 = vadd.f32 %v775_v32, %v473_v33  ;;  %v477_v36 = vadd.f32 %v775_v32, %v476_v34 }
 0x204   : > { %479 = vst [vmem:[%s1177_s9] sm:$0xff] %v474_v35 }
 0x205   : > { %480 = vst [vmem:[%s1177_s9 + $0x8] sm:$0xff] %v477_v36 }
 0x206   : > { %923 = shalt.err (!%p920_p1)
}
 0x207   : > { %s996_s0 = smov 128   ;;  %s997_s28 = smov 384  }
 0x208   : > { %s998_s7 = smov 8  }
 0x209   : > { %674 = dma.vmem_to_hbm [thread:$0]  (%p1081_p8), %s497_s16, 256, %s499_s13, %s482_s21, %s996_s0, %s997_s28, %s998_s7  }
 0x20a PF: > { %p701_p2 = scmp.ge.s32.totalorder %s986_s23, 2  ;;  %s513_s29 = sand.u32 1, %s966_s18  }
 0x20b   : > { %s514_s24 = scalar_lea.sflag [#allocation5], %s513_s29 }
 0x20c   : > { %p691_p4 = pnand %p701_p2, %p1085_p9 }
 0x20e   : > { %p692_p5 = pneg %p691_p4 }
 0x210   : > { %961 = dma.done.wait (%p692_p5), %s514_s24, 256  }
 0x211   : > { %963 = vsyncadd (%p692_p5), %s514_s24, 4294967040  ;;  %s23_s23 = sadd.s32 1, %s986_s23   ;;  %s1279_s18 = smov %s970_s19 }
 0x212   : > { %p20_p3 = scmp.ge.s32.totalorder %s23_s23, 5   ;;  %s1280_s19 = smov %s974_s20 }
 0x213   : > { %s1281_s20 = smov %s1141_s15  ;;  %s1282_s21 = smov %s982_s22 }
 0x214   : > { %s1283_s22 = smov %s1285_s12  ;;  %22 = sbr.rel (!%p20_p3) target bundleno = 12 (0xc), region = 106 }
 0x219   :  { %520 = vsyncpa [#allocation4], 1 }
 0x21a   :  { %522 = vsyncpa [#allocation4 + $0x1], 1 }
 0x21b   :  { %523 = vsyncpa [#allocation7], 1 }
 0x21c   :  { %524 = vsyncpa [#allocation10], 1 }
 0x21d   :  { %526 = vsyncpa [#allocation10 + $0x1], 1 }
 0x21e   :  { %527 = vsyncpa [#allocation5], 1 }
 0x21f   :  { %529 = vsyncpa [#allocation5 + $0x1], 1 }

</bundles_post_ra>
